<compile_context>
chip_gen: v7x
topology: tpu7x:2x2x1
jax: 0.10.0
libtpu: 0.0.40
codegen_flags: <defaults>
</compile_context>

<pallas_src>
import functools

import jax
import jax.numpy as jnp
from jax import lax
from jax.experimental import pallas as pl
from jax.experimental.pallas import tpu as pltpu

_TN_MAX = 512
_TK_MAX = 1024  # K (hidden) tile cap; H <= _TK_MAX uses a single full-H block.


def _round_up(a, b):
    return (a + b - 1) // b * b


def _vmem_capacity_bytes():
    try:
        return int(pltpu.get_tpu_info().vmem_capacity_bytes)
    except Exception:
        return 64 << 20  # conservative fallback: v7x per-TensorCore VMEM


def _cosine_sim_kernel(x_ref, y_ref, o_ref, acc_ref, ssx_ref, ssy_ref, *,
                       inv_temp, eps):
    # x_ref: (tm, tk), y_ref: (tn, tk), o_ref: (tm, tn)
    # acc_ref: (tm, tn) f32, ssx_ref: (tm, 1) f32, ssy_ref: (1, tn) f32
    k = pl.program_id(2)

    @pl.when(k == 0)
    def _init():
        acc_ref[...] = jnp.zeros_like(acc_ref)
        ssx_ref[...] = jnp.zeros_like(ssx_ref)
        ssy_ref[...] = jnp.zeros_like(ssy_ref)

    x = x_ref[...]  # native dtype (bf16 stays bf16)
    y = y_ref[...]

    # MXU: pairwise dots, contracting the last dim of BOTH operands (no in-kernel
    # transpose), f32 accumulation across the K grid axis.
    acc_ref[...] += lax.dot_general(
        x, y,
        dimension_numbers=(((1,), (1,)), ((), ())),
        preferred_element_type=jnp.float32,
    )

    # Row sums of squares, accumulated in f32.  These ride VPU/XLU/MXU slack
    # under the big matmul, replacing the wrapper's extra HBM norm pass.
    xf = x.astype(jnp.float32)
    yf = y.astype(jnp.float32)
    ssx_ref[...] += jnp.sum(xf * xf, axis=1, keepdims=True)  # (tm, 1)
    # ones(1,tk) contracted with (y*y) on the MXU gives the y sums directly in
    # the (1, tn) lane-major orientation needed for the epilogue broadcast.
    ones_row = jnp.ones((1, y.shape[1]), jnp.float32)
    ssy_ref[...] += lax.dot_general(
        ones_row, yf * yf,
        dimension_numbers=(((1,), (1,)), ((), ())),
        preferred_element_type=jnp.float32,
    )  # (1, tn)

    @pl.when(k == pl.num_programs(2) - 1)
    def _epilogue():
        acc = acc_ref[...]
        xn = jnp.sqrt(ssx_ref[...])  # (tm, 1)
        yn = jnp.sqrt(ssy_ref[...])  # (1, tn)
        # Exact reciprocals on tm + tn values (not tm*tn tile elements).
        cos = acc * (1.0 / xn) * (1.0 / yn)
        # PyTorch clamp: dot / max(||x||*||y||, eps) -> select on the product.
        cos = jnp.where(xn * yn < eps, acc * (1.0 / eps), cos)
        o_ref[...] = (cos * inv_temp).astype(o_ref.dtype)


@functools.partial(jax.jit, static_argnames=("temp", "eps", "out_dtype", "max_tk"))
def similarity(x, y, *, temp=0.05, eps=1e-8, out_dtype=jnp.float32, max_tk=_TK_MAX):
    """Pallas equivalent of Similarity.forward(x, y).

    x: [M, 1, H], y: [1, N, H]  ->  out: [M, N]  (out_dtype, default float32;
    pass jnp.bfloat16 to halve the output HBM writeback for logits paths).
    """
    assert x.ndim == 3 and y.ndim == 3
    assert x.shape[1] == 1 and y.shape[0] == 1
    assert x.shape[2] == y.shape[2], "hidden dims must match"

    x2d = x[:, 0, :]  # [M, H]
    y2d = y[0, :, :]  # [N, H]
    M, H = x2d.shape
    N = y2d.shape[0]

    # Feed the MXU in the inputs' (promoted) native dtype; never upcast bf16.
    if x2d.dtype != y2d.dtype:
        cdt = jnp.promote_types(x2d.dtype, y2d.dtype)
        x2d = x2d.astype(cdt)
        y2d = y2d.astype(cdt)
    dsize = x2d.dtype.itemsize
    sub = {4: 8, 2: 16, 1: 32}.get(dsize, 8)  # dtype-native sublane multiple

    # ---- Tile selection (VMEM-capacity aware) --------------------------------
    vmem_cap = _vmem_capacity_bytes()
    tm_max = 1024 if vmem_cap >= (96 << 20) else 512  # bigger tm on v5e/v6e cuts y re-streams
    vmem_limit = int(max(32 << 20, min(vmem_cap - (24 << 20), 110 << 20)))

    tm = min(tm_max, _round_up(M, sub))
    tn = min(_TN_MAX, _round_up(N, 128))

    # Megacore: guarantee >= 2 parallel blocks when possible so a (1,1) grid
    # doesn't leave the second TensorCore idle.
    if pl.cdiv(M, tm) * pl.cdiv(N, tn) == 1:
        if tn >= 256:
            tn = max(128, _round_up(tn // 2, 128))
        elif tm >= 2 * sub:
            tm = max(sub, _round_up(tm // 2, sub))

    # K (hidden) axis tiling: decouples per-tile VMEM use from H.
    if H <= max_tk:
        tk, ksteps = H, 1  # full-H block (allowed even if H % 128 != 0); no K pad
    else:
        ksteps = pl.cdiv(H, max_tk)
        tk = _round_up(pl.cdiv(H, ksteps), 128)
    Mp, Np, Hp = _round_up(M, tm), _round_up(N, tn), tk * ksteps

    # Zero padding: zeros contribute nothing to dots or norms; eps-clamped padded
    # rows/cols are sliced off below.
    # TODO(synk): for very large ragged M/N, use masked edge blocks instead of jnp.pad copies.
    if (Mp, Hp) != (M, H):
        x2d = jnp.pad(x2d, ((0, Mp - M), (0, Hp - H)))
    if (Np, Hp) != (N, H):
        y2d = jnp.pad(y2d, ((0, Np - N), (0, Hp - H)))

    kernel = functools.partial(
        _cosine_sim_kernel, inv_temp=float(1.0 / temp), eps=float(eps)
    )

    cost = pl.CostEstimate(
        flops=2 * Mp * Np * Hp + 4 * (Mp + Np) * Hp,
        transcendentals=Mp + Np,
        bytes_accessed=(Mp + Np) * Hp * dsize + Mp * Np * jnp.dtype(out_dtype).itemsize,
    )

    out = pl.pallas_call(
        kernel,
        out_shape=jax.ShapeDtypeStruct((Mp, Np), out_dtype),
        grid_spec=pltpu.PrefetchScalarGridSpec(
            num_scalar_prefetch=0,
            grid=(Mp // tm, Np // tn, ksteps),
            in_specs=[
                pl.BlockSpec((tm, tk), lambda i, j, k: (i, k)),
                pl.BlockSpec((tn, tk), lambda i, j, k: (j, k)),
            ],
            out_specs=pl.BlockSpec((tm, tn), lambda i, j, k: (i, j)),
            scratch_shapes=[
                pltpu.VMEM((tm, tn), jnp.float32),  # dot accumulator
                pltpu.VMEM((tm, 1), jnp.float32),   # sum(x^2) accumulator
                pltpu.VMEM((1, tn), jnp.float32),   # sum(y^2) accumulator
            ],
        ),
        compiler_params=pltpu.CompilerParams(
            dimension_semantics=("parallel", "parallel", "arbitrary"),
            vmem_limit_bytes=vmem_limit,
        ),
        cost_estimate=cost,
    )(x2d, y2d)

    return out[:M, :N]


def _reference(x, y, temp, eps=1e-8):
    # Pure-JAX reference matching torch.nn.CosineSimilarity(dim=-1)(x, y) / temp.
    x32 = x.astype(jnp.float32)
    y32 = y.astype(jnp.float32)
    dots = jnp.sum(x32 * y32, axis=-1)
    nx = jnp.linalg.norm(x32, axis=-1)
    ny = jnp.linalg.norm(y32, axis=-1)
    return dots / jnp.maximum(nx * ny, eps) / temp


if __name__ == "__main__":
    key = jax.random.PRNGKey(0)
    kx, ky, kx2, ky2, kx3, ky3 = jax.random.split(key, 6)

    temp = 0.05  # deterministic "parameter" from __init__(temp)

    # Case 1: canonical SimCSE usage, f32 inputs.
    M, N, H = 8, 8, 32
    x = jax.random.normal(kx, (M, 1, H), dtype=jnp.float32)
    y = jax.random.normal(ky, (1, N, H), dtype=jnp.float32)
    out = jax.block_until_ready(similarity(x, y, temp=temp))
    ref = _reference(x, y, temp)
    assert out.shape == (M, N)
    # Tolerance reflects the MXU's bf16 feed for f32 inputs at default precision.
    assert jnp.allclose(out, ref, atol=1.5e-2, rtol=1e-2), (
        f"f32 case: max abs err = {jnp.max(jnp.abs(out - ref))}"
    )

    # Case 2: bf16 inputs (native bf16 MXU path) with ragged M/N to exercise padding.
    M2, N2, H2 = 12, 24, 64
    x_bf = jax.random.normal(kx2, (M2, 1, H2), dtype=jnp.float32).astype(jnp.bfloat16)
    y_bf = jax.random.normal(ky2, (1, N2, H2), dtype=jnp.float32).astype(jnp.bfloat16)
    out2 = jax.block_until_ready(similarity(x_bf, y_bf, temp=temp))
    ref2 = _reference(x_bf, y_bf, temp)
    assert out2.shape == (M2, N2)
    assert jnp.allclose(out2, ref2, atol=3e-2, rtol=2e-2), (
        f"bf16 case: max abs err = {jnp.max(jnp.abs(out2 - ref2))}"
    )

    # Case 3: force a small K tile (max_tk=128) so the K-axis accumulator path
    # (multi-step reduction grid) is exercised at a small shape.
    M3, N3, H3 = 16, 8, 256
    x3 = jax.random.normal(kx3, (M3, 1, H3), dtype=jnp.float32)
    y3 = jax.random.normal(ky3, (1, N3, H3), dtype=jnp.float32)
    out3 = jax.block_until_ready(similarity(x3, y3, temp=temp, max_tk=128))
    ref3 = _reference(x3, y3, temp)
    assert out3.shape == (M3, N3)
    assert jnp.allclose(out3, ref3, atol=1.5e-2, rtol=1e-2), (
        f"K-tiled case: max abs err = {jnp.max(jnp.abs(out3 - ref3))}"
    )

    print("KERNEL_OK")
</pallas_src>

<mosaic_0001>
module attributes {stable_mosaic.version = 11 : i64} {
  func.func @_cosine_sim_kernel(%arg0: i32, %arg1: i32, %arg2: i32, %arg3: memref<8x32xf32, #tpu.memory_space<vmem>>, %arg4: memref<128x32xf32, #tpu.memory_space<vmem>>, %arg5: memref<8x128xf32, #tpu.memory_space<vmem>>, %arg6: memref<8x128xf32, #tpu.memory_space<vmem>>, %arg7: memref<8x1xf32, #tpu.memory_space<vmem>>, %arg8: memref<1x128xf32, #tpu.memory_space<vmem>>) attributes {dimension_semantics = [#tpu.dimension_semantics<parallel>, #tpu.dimension_semantics<parallel>, #tpu.dimension_semantics<arbitrary>], iteration_bounds = array<i64: 1, 1, 1>, scalar_prefetch = 0 : i64, scratch_operands = 3 : i64, tpu.core_type = #tpu.core_type<tc>, window_params = [{transform_indices = @transform_0, window_bounds = array<i64: 8, 32>}, {transform_indices = @transform_1, window_bounds = array<i64: 128, 32>}, {transform_indices = @transform_2, window_bounds = array<i64: 8, 128>}]} {
    %c0_i32 = arith.constant 0 : i32
    %0 = arith.cmpi eq, %arg2, %c0_i32 : i32
    %1 = arith.extui %0 : i1 to i32
    %c0_i32_0 = arith.constant 0 : i32
    %2 = arith.cmpi ne, %1, %c0_i32_0 : i32
    scf.if %2 {
      %cst_21 = arith.constant 0.000000e+00 : f32
      %24 = vector.broadcast %cst_21 : f32 to vector<8x128xf32>
      %c0_22 = arith.constant 0 : index
      %c0_23 = arith.constant 0 : index
      %25 = vector.load %arg6[%c0_22, %c0_23] : memref<8x128xf32, #tpu.memory_space<vmem>>, vector<8x128xf32>
      tpu.vector_store %arg6[%c0_22, %c0_23], %24 {strides = array<i32>} : memref<8x128xf32, #tpu.memory_space<vmem>>, vector<8x128xf32>,
      %cst_24 = arith.constant 0.000000e+00 : f32
      %26 = vector.broadcast %cst_24 : f32 to vector<8x1xf32>
      %c0_25 = arith.constant 0 : index
      %c0_26 = arith.constant 0 : index
      %27 = vector.load %arg7[%c0_25, %c0_26] : memref<8x1xf32, #tpu.memory_space<vmem>>, vector<8x1xf32>
      tpu.vector_store %arg7[%c0_25, %c0_26], %26 {strides = array<i32>} : memref<8x1xf32, #tpu.memory_space<vmem>>, vector<8x1xf32>,
      %cst_27 = arith.constant 0.000000e+00 : f32
      %28 = vector.broadcast %cst_27 : f32 to vector<1x128xf32>
      %c0_28 = arith.constant 0 : index
      %c0_29 = arith.constant 0 : index
      %29 = vector.load %arg8[%c0_28, %c0_29] : memref<1x128xf32, #tpu.memory_space<vmem>>, vector<1x128xf32>
      tpu.vector_store %arg8[%c0_28, %c0_29], %28 {strides = array<i32>} : memref<1x128xf32, #tpu.memory_space<vmem>>, vector<1x128xf32>,
    } else {
    }
    %c0 = arith.constant 0 : index
    %c0_1 = arith.constant 0 : index
    %3 = vector.load %arg3[%c0, %c0_1] : memref<8x32xf32, #tpu.memory_space<vmem>>, vector<8x32xf32>
    %c0_2 = arith.constant 0 : index
    %c0_3 = arith.constant 0 : index
    %4 = vector.load %arg4[%c0_2, %c0_3] : memref<128x32xf32, #tpu.memory_space<vmem>>, vector<128x32xf32>
    %c0_4 = arith.constant 0 : index
    %c0_5 = arith.constant 0 : index
    %5 = vector.load %arg6[%c0_4, %c0_5] : memref<8x128xf32, #tpu.memory_space<vmem>>, vector<8x128xf32>
    %cst = arith.constant dense<0.000000e+00> : vector<8x128xf32>
    %6 = tpu.matmul %3, %4, %cst {dimension_numbers = #tpu.dot_dimension_numbers<[1], [1], [0], [0], [0, 0, 1, 0], [], []>} : vector<8x32xf32>, vector<128x32xf32>, vector<8x128xf32> -> vector<8x128xf32>
    %7 = arith.addf %5, %6 : vector<8x128xf32>
    %c0_6 = arith.constant 0 : index
    %c0_7 = arith.constant 0 : index
    %8 = vector.load %arg6[%c0_6, %c0_7] : memref<8x128xf32, #tpu.memory_space<vmem>>, vector<8x128xf32>
    tpu.vector_store %arg6[%c0_6, %c0_7], %7 {strides = array<i32>} : memref<8x128xf32, #tpu.memory_space<vmem>>, vector<8x128xf32>,
    %c0_8 = arith.constant 0 : index
    %c0_9 = arith.constant 0 : index
    %9 = vector.load %arg7[%c0_8, %c0_9] : memref<8x1xf32, #tpu.memory_space<vmem>>, vector<8x1xf32>
    %10 = arith.mulf %3, %3 : vector<8x32xf32>
    %cst_10 = arith.constant dense<0.000000e+00> : vector<8xf32>
    %11 = vector.multi_reduction <add>, %10, %cst_10 [1] : vector<8x32xf32> to vector<8xf32>
    %12 = vector.shape_cast %11 : vector<8xf32> to vector<8x1xf32>
    %13 = arith.addf %9, %12 : vector<8x1xf32>
    %c0_11 = arith.constant 0 : index
    %c0_12 = arith.constant 0 : index
    %14 = vector.load %arg7[%c0_11, %c0_12] : memref<8x1xf32, #tpu.memory_space<vmem>>, vector<8x1xf32>
    tpu.vector_store %arg7[%c0_11, %c0_12], %13 {strides = array<i32>} : memref<8x1xf32, #tpu.memory_space<vmem>>, vector<8x1xf32>,
    %cst_13 = arith.constant 1.000000e+00 : f32
    %15 = vector.broadcast %cst_13 : f32 to vector<1x32xf32>
    %c0_14 = arith.constant 0 : index
    %c0_15 = arith.constant 0 : index
    %16 = vector.load %arg8[%c0_14, %c0_15] : memref<1x128xf32, #tpu.memory_space<vmem>>, vector<1x128xf32>
    %17 = arith.mulf %4, %4 : vector<128x32xf32>
    %cst_16 = arith.constant dense<0.000000e+00> : vector<1x128xf32>
    %18 = tpu.matmul %15, %17, %cst_16 {dimension_numbers = #tpu.dot_dimension_numbers<[1], [1], [0], [0], [0, 0, 1, 0], [], []>} : vector<1x32xf32>, vector<128x32xf32>, vector<1x128xf32> -> vector<1x128xf32>
    %19 = arith.addf %16, %18 : vector<1x128xf32>
    %c0_17 = arith.constant 0 : index
    %c0_18 = arith.constant 0 : index
    %20 = vector.load %arg8[%c0_17, %c0_18] : memref<1x128xf32, #tpu.memory_space<vmem>>, vector<1x128xf32>
    tpu.vector_store %arg8[%c0_17, %c0_18], %19 {strides = array<i32>} : memref<1x128xf32, #tpu.memory_space<vmem>>, vector<1x128xf32>,
    %c0_i32_19 = arith.constant 0 : i32
    %21 = arith.cmpi eq, %arg2, %c0_i32_19 : i32
    %22 = arith.extui %21 : i1 to i32
    %c0_i32_20 = arith.constant 0 : i32
    %23 = arith.cmpi ne, %22, %c0_i32_20 : i32
    scf.if %23 {
      %c0_21 = arith.constant 0 : index
      %c0_22 = arith.constant 0 : index
      %24 = vector.load %arg6[%c0_21, %c0_22] : memref<8x128xf32, #tpu.memory_space<vmem>>, vector<8x128xf32>
      %c0_23 = arith.constant 0 : index
      %c0_24 = arith.constant 0 : index
      %25 = vector.load %arg7[%c0_23, %c0_24] : memref<8x1xf32, #tpu.memory_space<vmem>>, vector<8x1xf32>
      %26 = math.sqrt %25 : vector<8x1xf32>
      %c0_25 = arith.constant 0 : index
      %c0_26 = arith.constant 0 : index
      %27 = vector.load %arg8[%c0_25, %c0_26] : memref<1x128xf32, #tpu.memory_space<vmem>>, vector<1x128xf32>
      %28 = math.sqrt %27 : vector<1x128xf32>
      %cst_27 = arith.constant 1.000000e+00 : f32
      %29 = vector.broadcast %cst_27 : f32 to vector<8x1xf32>
      %30 = arith.divf %29, %26 : vector<8x1xf32>
      %31 = vector.broadcast %30 : vector<8x1xf32> to vector<8x128xf32>
      %32 = arith.mulf %24, %31 : vector<8x128xf32>
      %cst_28 = arith.constant 1.000000e+00 : f32
      %33 = vector.broadcast %cst_28 : f32 to vector<1x128xf32>
      %34 = arith.divf %33, %28 : vector<1x128xf32>
      %35 = vector.broadcast %34 : vector<1x128xf32> to vector<8x128xf32>
      %36 = arith.mulf %32, %35 : vector<8x128xf32>
      %37 = vector.broadcast %26 : vector<8x1xf32> to vector<8x128xf32>
      %38 = vector.broadcast %28 : vector<1x128xf32> to vector<8x128xf32>
      %39 = arith.mulf %37, %38 : vector<8x128xf32>
      %cst_29 = arith.constant 9.99999993E-9 : f32
      %40 = vector.broadcast %cst_29 : f32 to vector<8x128xf32>
      %41 = arith.cmpf olt, %39, %40 : vector<8x128xf32>
      %cst_30 = arith.constant 1.000000e+08 : f32
      %42 = vector.broadcast %cst_30 : f32 to vector<8x128xf32>
      %43 = arith.mulf %24, %42 : vector<8x128xf32>
      %44 = arith.select %41, %43, %36 : vector<8x128xi1>, vector<8x128xf32>
      %cst_31 = arith.constant 2.000000e+01 : f32
      %45 = vector.broadcast %cst_31 : f32 to vector<8x128xf32>
      %46 = arith.mulf %44, %45 : vector<8x128xf32>
      %c0_32 = arith.constant 0 : index
      %c0_33 = arith.constant 0 : index
      %47 = vector.load %arg5[%c0_32, %c0_33] : memref<8x128xf32, #tpu.memory_space<vmem>>, vector<8x128xf32>
      tpu.vector_store %arg5[%c0_32, %c0_33], %46 {strides = array<i32>} : memref<8x128xf32, #tpu.memory_space<vmem>>, vector<8x128xf32>,
    } else {
    }
    return
  }
  func.func @transform_0(%arg0: i32, %arg1: i32, %arg2: i32) -> (i32, i32) {
    %c0_i32 = arith.constant 0 : i32
    return %arg0, %arg2 : i32, i32
  }
  func.func @transform_1(%arg0: i32, %arg1: i32, %arg2: i32) -> (i32, i32) {
    %c0_i32 = arith.constant 0 : i32
    return %arg1, %arg2 : i32, i32
  }
  func.func @transform_2(%arg0: i32, %arg1: i32, %arg2: i32) -> (i32, i32) {
    %c0_i32 = arith.constant 0 : i32
    return %arg0, %arg1 : i32, i32
  }
}

</mosaic_0001>

<bundles_post_ra>
// kernel: similarity.1
= control target key start
LH: loop header
LB: loop body
LE: loop exit
PB: predicated region body
PF: predicated region fallthrough
CT: control target
= control target key end

     0   :  { %vm38_vm0 = vcmask 261120   ;;  %vm17_vm1 = vcmask 7168   ;;  %v620_v3 = vmov 0.0|0.0   ;;  %v621_v11 = vmov 0.0   ;;  %s768_s0 = inlined_call_operand.vmem [shape: f32[8,32], index: 0, kind: input, shape index: {}]   ;;  %s769_s1 = inlined_call_operand.vmem [shape: f32[128,32], index: 1, kind: input, shape index: {}]   ;;  %s770_s2 = inlined_call_operand.hbm [shape: f32[8,128], index: 2, kind: output, shape index: {}]  }
   0x1   :  { %v644_v0 = vld [vmem:[%s768_s0] sm:$0xff]  ;;  %v22_v2 = vld [vmem:[%s769_s1 + $0x8] sm:$0xff]  ;;  %548 = vmatprep.subr.bf16.mxu1 %v620_v3  ;;  %516 = vmatprep.subr.bf16.mxu0 %v620_v3  ;;  %vm658_vm2 = vmpackc.low %vm38_vm0, %vm38_vm0  ;;  %18 = vst.msk [vmem:[#allocation3] sm:$0xff] %vm17_vm1, %v621_v11 }
   0x2   :  { %v21_v1 = vld [vmem:[%s769_s1] sm:$0xff]  ;;  %v163_v4 = vmul.f32 %v644_v0, %v644_v0  ;;  %v172_v6 = vmul.f32 %v22_v2, %v22_v2  ;;  %v23_v8 = vld [vmem:[%s769_s1 + $0x10] sm:$0xff]  ;;  %v24_v9 = vld [vmem:[%s769_s1 + $0x18] sm:$0xff]  ;;  %19 = vst [vmem:[#allocation4] sm:$0x1] %v621_v11 }
   0x3   :  { %v171_v5 = vmul.f32 %v21_v1, %v21_v1  ;;  %v517_v10 = vpack.c.bf16 %v22_v2, %v21_v1  ;;  %v173_v14 = vmul.f32 %v23_v8, %v23_v8  ;;  %v174_v15 = vmul.f32 %v24_v9, %v24_v9 }
   0x4   :  { %v164_v12 = vsel %vm38_vm0, %v163_v4, 0.0 }
   0x5   :  { %v549_v13 = vpack.c.bf16 %v172_v6, %v171_v5  ;;  %165 = vadd.xlane.f32.xlu0 %v164_v12  ;;  %519 = vmatpush3.bf16.xpose.msk.msra.mxu0 %vm658_vm2, %v517_v10 }
   0x6   :  { %520 = vmatprep.subr.bf16.mxu0 %v620_v3 }
   0x7   :  { %551 = vmatpush3.bf16.xpose.msk.msra.mxu1 %vm658_vm2, %v549_v13 }
   0x8   :  { %552 = vmatprep.subr.bf16.mxu1 %v620_v3 }
   0x9   :  { %7 = vsyncpa [#allocation6], 0  ;;  %vm622_vm3 = vmmov 0   ;;  %v521_v16 = vpack.c.bf16 %v24_v9, %v23_v8  ;;  %v553_v17 = vpack.c.bf16 %v174_v15, %v173_v14  ;;  %v25_v18 = vld [vmem:[%s769_s1 + $0x20] sm:$0xff]  ;;  %v26_v19 = vld [vmem:[%s769_s1 + $0x28] sm:$0xff]  ;;  %v623_v28 = vmov 0  }
   0xa   :  { %513 = vmatprep.mubr.msk.f32.mxu1 %vm622_vm3, %v621_v11  ;;  %478 = vmatprep.mubr.msk.f32.mxu0 %vm622_vm3, %v621_v11  ;;  %v175_v20 = vmul.f32 %v25_v18, %v25_v18  ;;  %v176_v21 = vmul.f32 %v26_v19, %v26_v19  ;;  %v525_v22 = vpack.c.bf16 %v26_v19, %v25_v18  ;;  %v27_v24 = vld [vmem:[%s769_s1 + $0x30] sm:$0xff]  ;;  %v28_v25 = vld [vmem:[%s769_s1 + $0x38] sm:$0xff]  ;;  %v29_v31 = vld [vmem:[%s769_s1 + $0x40] sm:$0xff]  ;;  %v624_v55 = vmov 1.0  }
   0xb   :  { %v177_v26 = vmul.f32 %v27_v24, %v27_v24  ;;  %v178_v27 = vmul.f32 %v28_v25, %v28_v25  ;;  %587 = vset.pattern.permute.xlu1 %v623_v28  ;;  %586 = vset.pattern.permute.xlu0 %v623_v28  ;;  %v529_v29 = vpack.c.bf16 %v28_v25, %v27_v24  ;;  %v30_v32 = vld [vmem:[%s769_s1 + $0x48] sm:$0xff]  ;;  %v31_v37 = vld [vmem:[%s769_s1 + $0x50] sm:$0xff]  ;;  %v32_v38 = vld [vmem:[%s769_s1 + $0x58] sm:$0xff]  ;;  %v341_v9 = vlaneseq }
   0xc   :  { %v557_v23 = vpack.c.bf16 %v176_v21, %v175_v20  ;;  %v179_v33 = vmul.f32 %v29_v31, %v29_v31  ;;  %v180_v34 = vmul.f32 %v30_v32, %v30_v32  ;;  %v533_v35 = vpack.c.bf16 %v30_v32, %v29_v31  ;;  %v33_v43 = vld [vmem:[%s769_s1 + $0x60] sm:$0xff]  ;;  %v34_v44 = vld [vmem:[%s769_s1 + $0x68] sm:$0xff]  ;;  %v35_v49 = vld [vmem:[%s769_s1 + $0x70] sm:$0xff] }
   0xd   :  { %523 = vmatpush3.bf16.xpose.msk.msra.mxu0 %vm658_vm2, %v521_v16  ;;  %v561_v30 = vpack.c.bf16 %v178_v27, %v177_v26  ;;  %v181_v39 = vmul.f32 %v31_v37, %v31_v37  ;;  %v182_v40 = vmul.f32 %v32_v38, %v32_v38  ;;  %v537_v41 = vpack.c.bf16 %v32_v38, %v31_v37  ;;  %v36_v50 = vld [vmem:[%s769_s1 + $0x78] sm:$0xff]  ;;  %v162_v56 = vld [vmem:[#allocation3] sm:$0xff]  ;;  %v170_v2 = vld [vmem:[#allocation4] sm:$0x1]  ;;  %s625_s1 = smov [#allocation5]  }
   0xe   :  { %524 = vmatprep.subr.bf16.mxu0 %v620_v3  ;;  %v565_v36 = vpack.c.bf16 %v180_v34, %v179_v33  ;;  %v183_v45 = vmul.f32 %v33_v43, %v33_v43  ;;  %v184_v46 = vmul.f32 %v34_v44, %v34_v44  ;;  %v541_v47 = vpack.c.bf16 %v34_v44, %v33_v43  ;;  %s370_s14 = sshll.u32 %s625_s1, 4  ;;  %s371_s14 = int_to_ptr.vmem [resolvable:$true] %s370_s14 }
   0xf   :  { %555 = vmatpush3.bf16.xpose.msk.msra.mxu1 %vm658_vm2, %v553_v17  ;;  %v569_v42 = vpack.c.bf16 %v182_v40, %v181_v39  ;;  %v185_v51 = vmul.f32 %v35_v49, %v35_v49  ;;  %v186_v52 = vmul.f32 %v36_v50, %v36_v50  ;;  %v545_v53 = vpack.c.bf16 %v36_v50, %v35_v49  ;;  %s596_s0 = scalar_lea.vmem %s371_s14, 128  ;;  %p601_p1 = scmp.lt.s32.totalorder %s371_s14, %s371_s14 }
  0x10   :  { %556 = vmatprep.subr.bf16.mxu1 %v620_v3  ;;  %v573_v48 = vpack.c.bf16 %v184_v46, %v183_v45  ;;  %v342_v14 = vshrl.u32 %v341_v9, 7  ;;  %p597_p0 = scmp.ne.s32.totalorder %s371_s14, %s596_s0  ;;  %p602_p2 = scmp.lt.s32.totalorder %s596_s0, %s596_s0 }
  0x11   :  { %v577_v54 = vpack.c.bf16 %v186_v52, %v185_v51 }
  0x12   :  { %v343_v16 = vsub.s32 0, %v342_v14  ;;  %p603_p3 = por %p602_p2, %p601_p1 }
  0x14   :  { %p604_p4 = pnand %p603_p3, %p597_p0 }
  0x15   :  { %527 = vmatpush3.bf16.xpose.msk.msra.mxu0 %vm658_vm2, %v525_v22 }
  0x16   :  { %528 = vmatprep.subr.bf16.mxu0 %v620_v3 }
  0x17   :  { %559 = vmatpush3.bf16.xpose.msk.msra.mxu1 %vm658_vm2, %v557_v23 }
  0x18   :  { %560 = vmatprep.subr.bf16.mxu1 %v620_v3 }
  0x1d   :  { %531 = vmatpush3.bf16.xpose.msk.msra.mxu0 %vm658_vm2, %v529_v29 }
  0x1e   :  { %532 = vmatprep.subr.bf16.mxu0 %v620_v3 }
  0x1f   :  { %563 = vmatpush3.bf16.xpose.msk.msra.mxu1 %vm658_vm2, %v561_v30 }
  0x20   :  { %564 = vmatprep.subr.bf16.mxu1 %v620_v3 }
  0x25   :  { %535 = vmatpush3.bf16.xpose.msk.msra.mxu0 %vm658_vm2, %v533_v35 }
  0x26   :  { %536 = vmatprep.subr.bf16.mxu0 %v620_v3 }
  0x27   :  { %567 = vmatpush3.bf16.xpose.msk.msra.mxu1 %vm658_vm2, %v565_v36 }
  0x28   :  { %568 = vmatprep.subr.bf16.mxu1 %v620_v3 }
  0x2d   :  { %539 = vmatpush3.bf16.xpose.msk.msra.mxu0 %vm658_vm2, %v537_v41 }
  0x2e   :  { %540 = vmatprep.subr.bf16.mxu0 %v620_v3 }
  0x2f   :  { %571 = vmatpush3.bf16.xpose.msk.msra.mxu1 %vm658_vm2, %v569_v42 }
  0x30   :  { %572 = vmatprep.subr.bf16.mxu1 %v620_v3 }
  0x35   :  { %543 = vmatpush3.bf16.xpose.msk.msra.mxu0 %vm658_vm2, %v541_v47 }
  0x36   :  { %544 = vmatprep.subr.bf16.mxu0 %v620_v3 }
  0x37   :  { %575 = vmatpush3.bf16.xpose.msk.msra.mxu1 %vm658_vm2, %v573_v48 }
  0x38   :  { %576 = vmatprep.subr.bf16.mxu1 %v620_v3 }
  0x3d   :  { %547 = vmatpush3.bf16.xpose.msk.msra.mxu0 %vm658_vm2, %v545_v53 }
  0x3f   :  { %579 = vmatpush3.bf16.xpose.msk.msra.mxu1 %vm658_vm2, %v577_v54 }
  0x44   :  { %479 = vmatmul.mubr.msk.f32.vlgmr.msra.gmra.mrb[0].mxu0 %vm38_vm0, %v644_v0 }
  0x46   :  { %514 = vmatmul.mubr.msk.f32.vlgmr.msra.gmra.mrb[0].mxu1 %vm38_vm0, %v624_v55 }
  0x92   :  { %v166_v57 = vpop.xlane.xlu0 %165 }
  0x93   :  { %v167_v58 = vadd.f32 %v166_v57, %v162_v56 }
  0x95   :  { %169 = vst.msk [vmem:[#allocation3] sm:$0xff] %vm17_vm1, %v167_v58 }
  0x9c   :  { %v314_v59 = vld [vmem:[#allocation3] sm:$0xff] }
  0x9d   :  { %588 = vrsqrt.f32 %v314_v59  ;;  %vm317_vm4 = vcmp.eq.f32.partialorder %v314_v59, inf  ;;  %v320_v62 = vand.u32 2147483648, %v314_v59  ;;  %vm319_vm5 = vcmp.eq.f32.partialorder %v314_v59, 0.0 }
  0xa7   :  { %v589_v60 = vpop.eup %588 }
  0xa8   :  { %v316_v61 = vmul.f32 %v589_v60, %v314_v59 }
  0xaa   :  { %v318_v63 = vsel %vm317_vm4, %v314_v59, %v316_v61 }
  0xab   :  { %v321_v1 = vsel %vm319_vm5, %v320_v62, %v318_v63 }
  0xac   :  { %349 = vperm.xlu1 %587, %v321_v1   ;;  %590 = vrcp.f32 %v321_v1 }
  0xb6   :  { %v591_v0 = vpop.eup %590 }
  0xb7   :  { %334 = vperm.xlu0 %586, %v591_v0  }
 0x117   :  { %v156_v3 = vpop.f32.mrb[0].mxu0 }
 0x118   :  { %v480_v5 = vpop.f32.mrb[1].mxu0  ;;  %v360_v24 = vmul.f32 1e+08, %v156_v3 }
 0x119   :  { %v304_v4 = vpop.f32.mrb[0].mxu1 }
 0x11a   :  { %v308_v6 = vadd.f32 %v304_v4, %v170_v2  ;;  %v515_v7 = vpop.f32.mrb[1].mxu1 }
 0x11c   :  { %309 = vst [vmem:[#allocation4] sm:$0x1] %v308_v6 }
 0x123   :  { %v322_v8 = vld [vmem:[#allocation4] sm:$0x1] }
 0x124   :  { %592 = vrsqrt.f32 %v322_v8  ;;  %vm325_vm6 = vcmp.eq.f32.partialorder %v322_v8, inf  ;;  %v328_v12 = vand.u32 2147483648, %v322_v8  ;;  %vm327_vm7 = vcmp.eq.f32.partialorder %v322_v8, 0.0 }
 0x12b   :  { %v350_v19 = vpop.permute.xlu1 %349 }
 0x12e   :  { %v593_v10 = vpop.eup %592 }
 0x12f   :  { %v324_v11 = vmul.f32 %v593_v10, %v322_v8 }
 0x131   :  { %v326_v13 = vsel %vm325_vm6, %v322_v8, %v324_v11 }
 0x132   :  { %v329_v15 = vsel %vm327_vm7, %v328_v12, %v326_v13 }
 0x133   :  { %594 = vrcp.f32 %v329_v15  ;;  %v356_v17 = vrot.slane %v329_v15, %v343_v16 }
 0x135   :  { %v358_v21 = vmul.f32 %v356_v17, %v350_v19 }
 0x136   :  { %v335_v18 = vpop.permute.xlu0 %334 }
 0x137   :  { %v337_v23 = vmul.f32 %v335_v18, %v156_v3  ;;  %vm359_vm8 = vcmp.lt.f32.partialorder %v358_v21, 1e-08 }
 0x13d   :  { %v595_v20 = vpop.eup %594 }
 0x13e   :  { %v344_v22 = vrot.slane %v595_v20, %v343_v16 }
 0x140   :  { %v346_v25 = vmul.f32 %v344_v22, %v337_v23 }
 0x142   :  { %v361_v26 = vsel %vm359_vm8, %v360_v24, %v346_v25 }
 0x143   :  { %v362_v27 = vmul.f32 20.0, %v361_v26 }
 0x145   :  { %363 = vst [vmem:[#allocation5] sm:$0xff] %v362_v27 }
 0x146   :  { %607 = shalt.err (!%p604_p4)
}
 0x147   :  { %s608_s17 = scalar_lea.hbm %s770_s2, 128 }
 0x148   :  { %p609_p5 = scmp.ne.s32.totalorder %s770_s2, %s608_s17  ;;  %p612_p6 = scmp.lt.u32.totalorder %s608_s17, %s770_s2 }
 0x14a   :  { %p614_p7 = pnand %p612_p6, %p609_p5 }
 0x14c   :  { %617 = shalt.err (!%p614_p7)
}
 0x14d   :  { %373 = dma.vmem_to_hbm [thread:$0]  %s371_s14, 128, %s770_s2, [#allocation6]  }
 0x14e   :  { %618 = dma.done.wait [#allocation6], 128  }
 0x14f   :  { %619 = vsyncadd [#allocation6], 4294967168 }
 0x150   :  { %377 = vsyncpa [#allocation6], 1 }

</bundles_post_ra>
